<compile_context>
chip_gen: v7x
topology: tpu7x:2x2x1
jax: 0.10.0
libtpu: 0.0.40
codegen_flags: <defaults>
</compile_context>

<pallas_src>
import functools
import math

import jax
import jax.numpy as jnp
from jax.experimental import pallas as pl
from jax.experimental.pallas import tpu as pltpu


# ----------------------------- Pallas kernel -------------------------------

def _layernorm(x, gamma, beta, eps=1e-5):
    mean = jnp.mean(x, axis=-1, keepdims=True)
    var = jnp.mean((x - mean) ** 2, axis=-1, keepdims=True)
    return (x - mean) * jax.lax.rsqrt(var + eps) * gamma + beta


def encoder_block_kernel(num_heads,
                         x_ref,
                         wq_ref, wk_ref, wv_ref,
                         bq_ref, bk_ref, bv_ref,
                         wo_ref, bo_ref,
                         g1_ref, be1_ref, g2_ref, be2_ref,
                         w1_ref, bf1_ref, w2_ref, bf2_ref,
                         o_ref):
    # One batch element per grid step: x_ref is (1, S, E) f32.
    x = x_ref[0]                               # (S, E)
    seq_len, embed = x.shape
    d_head = embed // num_heads
    scale = 1.0 / math.sqrt(d_head)
    bf16 = jnp.bfloat16

    xb = x.astype(bf16)
    # Head-batched view of the activations (leading-dim broadcast only).
    xh = jnp.broadcast_to(xb, (num_heads, seq_len, embed))      # (H, S, E)

    # ---- per-head Q/K/V projections: batched MXU einsums, no lane slicing ----
    qh = jnp.einsum('hse,hed->hsd', xh, wq_ref[...],
                    preferred_element_type=jnp.float32) + bq_ref[...]
    kh = jnp.einsum('hse,hed->hsd', xh, wk_ref[...],
                    preferred_element_type=jnp.float32) + bk_ref[...]
    vh = jnp.einsum('hse,hed->hsd', xh, wv_ref[...],
                    preferred_element_type=jnp.float32) + bv_ref[...]

    # Fold the 1/sqrt(d_head) scale into q at the bf16 cast (q is much smaller
    # than the (H, S, S) score tensor).
    qh = (qh * scale).astype(bf16)
    kh = kh.astype(bf16)
    vh = vh.astype(bf16)

    # ---- per-head scaled-dot-product attention (batch dim = heads) ----
    s = jnp.einsum('hqd,hkd->hqk', qh, kh,
                   preferred_element_type=jnp.float32)           # (H, S, S)
    s = s - jnp.max(s, axis=-1, keepdims=True)
    p = jnp.exp(s)
    p = p * pl.reciprocal(jnp.sum(p, axis=-1, keepdims=True), approx=True)
    ctx = jnp.einsum('hqk,hkd->hqd', p.astype(bf16), vh,
                     preferred_element_type=jnp.float32)          # (H, S, dh)

    # ---- output projection folded over heads: batched matmul + head sum ----
    # (replaces the lane-axis concat of per-head contexts; stays on MXU/VPU)
    attn = jnp.einsum('hsd,hde->hse', ctx.astype(bf16), wo_ref[...],
                      preferred_element_type=jnp.float32)         # (H, S, E)
    attn = jnp.sum(attn, axis=0) + bo_ref[...]                    # (S, E)

    # ---- residual + LayerNorm 1 (dropout == identity) ----
    h1 = _layernorm(x + attn, g1_ref[...], be1_ref[...])

    # ---- feed-forward: Linear -> ReLU -> Linear ----
    ff = jnp.dot(h1.astype(bf16), w1_ref[...],
                 preferred_element_type=jnp.float32) + bf1_ref[...]
    ff = jnp.maximum(ff, 0.0)
    ff = jnp.dot(ff.astype(bf16), w2_ref[...],
                 preferred_element_type=jnp.float32) + bf2_ref[...]

    # ---- residual + LayerNorm 2 (dropout == identity) ----
    o_ref[0] = _layernorm(h1 + ff, g2_ref[...], be2_ref[...]).astype(o_ref.dtype)


# ----------------------------- Pallas wrapper -------------------------------

def prepare_block_params(p, num_heads):
    """One-time (outside jit) per-head reshape + bf16 cast of the weights.

    Head convention matches the previous (verified) kernel: head h uses
    columns [h*dh:(h+1)*dh] of wq/wk/wv and rows [h*dh:(h+1)*dh] of wo.
    """
    E = p['wq'].shape[0]
    dh = E // num_heads
    bf16 = jnp.bfloat16

    def per_head_w(w):   # (E, E) -> (H, E, dh)
        return jnp.transpose(w.reshape(E, num_heads, dh), (1, 0, 2)).astype(bf16)

    def per_head_b(b):   # (1, E) -> (H, 1, dh)
        return b.reshape(num_heads, 1, dh).astype(jnp.float32)

    return dict(
        wq_h=per_head_w(p['wq']), wk_h=per_head_w(p['wk']), wv_h=per_head_w(p['wv']),
        bq_h=per_head_b(p['bq']), bk_h=per_head_b(p['bk']), bv_h=per_head_b(p['bv']),
        wo_h=p['wo'].reshape(num_heads, dh, E).astype(bf16),
        bo=p['bo'],
        g1=p['g1'], be1=p['be1'], g2=p['g2'], be2=p['be2'],
        w1=p['w1'].astype(bf16), bf1=p['bf1'],
        w2=p['w2'].astype(bf16), bf2=p['bf2'],
    )


def encoder_block_forward(x, kp, num_heads):
    """x: (N, S, E) float32; kp: prepared (per-head, bf16) block params."""
    N, S, E = x.shape
    H = num_heads
    dh = E // H
    FF = kp['w1'].shape[1]

    def resident(shape):
        nd = len(shape)
        return pl.BlockSpec(shape, lambda b, _nd=nd: (0,) * _nd)

    in_specs = [
        pl.BlockSpec((1, S, E), lambda b: (b, 0, 0)),          # x (per-batch block)
        resident((H, E, dh)), resident((H, E, dh)), resident((H, E, dh)),
        resident((H, 1, dh)), resident((H, 1, dh)), resident((H, 1, dh)),
        resident((H, dh, E)), resident((1, E)),
        resident((1, E)), resident((1, E)), resident((1, E)), resident((1, E)),
        resident((E, FF)), resident((1, FF)),
        resident((FF, E)), resident((1, E)),
    ]
    out_spec = pl.BlockSpec((1, S, E), lambda b: (b, 0, 0))

    args = (x,
            kp['wq_h'], kp['wk_h'], kp['wv_h'],
            kp['bq_h'], kp['bk_h'], kp['bv_h'],
            kp['wo_h'], kp['bo'],
            kp['g1'], kp['be1'], kp['g2'], kp['be2'],
            kp['w1'], kp['bf1'], kp['w2'], kp['bf2'])

    return pl.pallas_call(
        functools.partial(encoder_block_kernel, num_heads),
        out_shape=jax.ShapeDtypeStruct((N, S, E), jnp.float32),
        grid_spec=pltpu.PrefetchScalarGridSpec(
            num_scalar_prefetch=0,
            grid=(N,),                       # independent batch rows
            in_specs=in_specs,
            out_specs=out_spec,
        ),
        compiler_params=pltpu.CompilerParams(
            dimension_semantics=("parallel",)),   # shards across v7x's 2 TCs
    )(*args)


def encoder_forward(tokens, src_embedding, pos_embedding, block_params_list,
                    num_heads):
    """tokens: (N, S) int32; block_params_list: prepared per-block params."""
    N, S = tokens.shape
    word_embedding = jnp.take(src_embedding, tokens, axis=0)     # (N, S, E)
    position_embedding = pos_embedding[:S][None, :, :]           # (1, S, E)
    embedding = word_embedding + position_embedding              # dropout == identity

    # Reference-bug reproduction: every block consumes `embedding` and only the
    # last block's output is returned, so earlier blocks are dead work.
    return encoder_block_forward(embedding, block_params_list[-1], num_heads)


# ----------------------------- parameter init -------------------------------

def init_block_params(key, embed_size, dim_feedforward):
    ks = jax.random.split(key, 6)
    s = 0.02
    f32 = jnp.float32
    return dict(
        wq=jax.random.normal(ks[0], (embed_size, embed_size), f32) * s,
        bq=jnp.zeros((1, embed_size), f32),
        wk=jax.random.normal(ks[1], (embed_size, embed_size), f32) * s,
        bk=jnp.zeros((1, embed_size), f32),
        wv=jax.random.normal(ks[2], (embed_size, embed_size), f32) * s,
        bv=jnp.zeros((1, embed_size), f32),
        wo=jax.random.normal(ks[3], (embed_size, embed_size), f32) * s,
        bo=jnp.zeros((1, embed_size), f32),
        g1=jnp.ones((1, embed_size), f32),
        be1=jnp.zeros((1, embed_size), f32),
        g2=jnp.ones((1, embed_size), f32),
        be2=jnp.zeros((1, embed_size), f32),
        w1=jax.random.normal(ks[4], (embed_size, dim_feedforward), f32) * s,
        bf1=jnp.zeros((1, dim_feedforward), f32),
        w2=jax.random.normal(ks[5], (dim_feedforward, embed_size), f32) * s,
        bf2=jnp.zeros((1, embed_size), f32),
    )


# ----------------------------------- main ------------------------------------

if __name__ == "__main__":
    # Small shapes consistent with the module.
    N, S = 2, 8                 # batch, seq_len
    VOCAB = 50
    MAX_SEQ_LEN = 100
    EMBED = 32
    NUM_HEADS = 4
    DIM_FF = 64
    NUM_BLOCKS = 2

    root = jax.random.PRNGKey(0)
    k_tok, k_src, k_pos, k_blocks = jax.random.split(root, 4)

    tokens = jax.random.randint(k_tok, (N, S), 0, VOCAB, dtype=jnp.int32)
    src_embedding = jax.random.normal(k_src, (VOCAB, EMBED), jnp.float32) * 0.02
    pos_embedding = jax.random.normal(k_pos, (MAX_SEQ_LEN, EMBED), jnp.float32) * 0.02

    block_keys = jax.random.split(k_blocks, NUM_BLOCKS)
    # Per-head reshape + bf16 cast done ONCE here, not per jitted call.
    block_params_list = [
        prepare_block_params(init_block_params(bk, EMBED, DIM_FF), NUM_HEADS)
        for bk in block_keys
    ]

    fwd = jax.jit(functools.partial(encoder_forward, num_heads=NUM_HEADS))
    out = fwd(tokens, src_embedding, pos_embedding, block_params_list)
    out = jax.block_until_ready(out)
    assert out.shape == (N, S, EMBED), out.shape
    assert jnp.all(jnp.isfinite(out))
    print("KERNEL_OK")
</pallas_src>

<mosaic_0001>
module attributes {stable_mosaic.version = 11 : i64} {
  func.func @encoder_block_kernel(%arg0: i32, %arg1: memref<1x8x32xf32, #tpu.memory_space<vmem>>, %arg2: memref<4x32x8xbf16, #tpu.memory_space<vmem>>, %arg3: memref<4x32x8xbf16, #tpu.memory_space<vmem>>, %arg4: memref<4x32x8xbf16, #tpu.memory_space<vmem>>, %arg5: memref<4x1x8xf32, #tpu.memory_space<vmem>>, %arg6: memref<4x1x8xf32, #tpu.memory_space<vmem>>, %arg7: memref<4x1x8xf32, #tpu.memory_space<vmem>>, %arg8: memref<4x8x32xbf16, #tpu.memory_space<vmem>>, %arg9: memref<1x32xf32, #tpu.memory_space<vmem>>, %arg10: memref<1x32xf32, #tpu.memory_space<vmem>>, %arg11: memref<1x32xf32, #tpu.memory_space<vmem>>, %arg12: memref<1x32xf32, #tpu.memory_space<vmem>>, %arg13: memref<1x32xf32, #tpu.memory_space<vmem>>, %arg14: memref<32x64xbf16, #tpu.memory_space<vmem>>, %arg15: memref<1x64xf32, #tpu.memory_space<vmem>>, %arg16: memref<64x32xbf16, #tpu.memory_space<vmem>>, %arg17: memref<1x32xf32, #tpu.memory_space<vmem>>, %arg18: memref<1x8x32xf32, #tpu.memory_space<vmem>>) attributes {dimension_semantics = [#tpu.dimension_semantics<parallel>], iteration_bounds = array<i64: 2>, scalar_prefetch = 0 : i64, scratch_operands = 0 : i64, tpu.core_type = #tpu.core_type<tc>, window_params = [{transform_indices = @transform_0, window_bounds = array<i64: 1, 8, 32>}, {pipeline_mode = #tpu.pipeline_mode<synchronous>, transform_indices = @transform_1, window_bounds = array<i64: 4, 32, 8>}, {pipeline_mode = #tpu.pipeline_mode<synchronous>, transform_indices = @transform_2, window_bounds = array<i64: 4, 32, 8>}, {pipeline_mode = #tpu.pipeline_mode<synchronous>, transform_indices = @transform_3, window_bounds = array<i64: 4, 32, 8>}, {pipeline_mode = #tpu.pipeline_mode<synchronous>, transform_indices = @transform_4, window_bounds = array<i64: 4, 1, 8>}, {pipeline_mode = #tpu.pipeline_mode<synchronous>, transform_indices = @transform_5, window_bounds = array<i64: 4, 1, 8>}, {pipeline_mode = #tpu.pipeline_mode<synchronous>, transform_indices = @transform_6, window_bounds = array<i64: 4, 1, 8>}, {pipeline_mode = #tpu.pipeline_mode<synchronous>, transform_indices = @transform_7, window_bounds = array<i64: 4, 8, 32>}, {pipeline_mode = #tpu.pipeline_mode<synchronous>, transform_indices = @transform_8, window_bounds = array<i64: 1, 32>}, {pipeline_mode = #tpu.pipeline_mode<synchronous>, transform_indices = @transform_9, window_bounds = array<i64: 1, 32>}, {pipeline_mode = #tpu.pipeline_mode<synchronous>, transform_indices = @transform_10, window_bounds = array<i64: 1, 32>}, {pipeline_mode = #tpu.pipeline_mode<synchronous>, transform_indices = @transform_11, window_bounds = array<i64: 1, 32>}, {pipeline_mode = #tpu.pipeline_mode<synchronous>, transform_indices = @transform_12, window_bounds = array<i64: 1, 32>}, {pipeline_mode = #tpu.pipeline_mode<synchronous>, transform_indices = @transform_13, window_bounds = array<i64: 32, 64>}, {pipeline_mode = #tpu.pipeline_mode<synchronous>, transform_indices = @transform_14, window_bounds = array<i64: 1, 64>}, {pipeline_mode = #tpu.pipeline_mode<synchronous>, transform_indices = @transform_15, window_bounds = array<i64: 64, 32>}, {pipeline_mode = #tpu.pipeline_mode<synchronous>, transform_indices = @transform_16, window_bounds = array<i64: 1, 32>}, {transform_indices = @transform_17, window_bounds = array<i64: 1, 8, 32>}]} {
    %c0 = arith.constant 0 : index
    %c0_0 = arith.constant 0 : index
    %c0_1 = arith.constant 0 : index
    %0 = vector.load %arg1[%c0, %c0_0, %c0_1] : memref<1x8x32xf32, #tpu.memory_space<vmem>>, vector<1x8x32xf32>
    %1 = vector.shape_cast %0 : vector<1x8x32xf32> to vector<8x32xf32>
    %2 = arith.truncf %1 : vector<8x32xf32> to vector<8x32xbf16>
    %3 = vector.shape_cast %2 : vector<8x32xbf16> to vector<1x8x32xbf16>
    %4 = vector.broadcast %3 : vector<1x8x32xbf16> to vector<4x8x32xbf16>
    %c0_2 = arith.constant 0 : index
    %c0_3 = arith.constant 0 : index
    %c0_4 = arith.constant 0 : index
    %5 = vector.load %arg2[%c0_2, %c0_3, %c0_4] : memref<4x32x8xbf16, #tpu.memory_space<vmem>>, vector<4x32x8xbf16>
    "tpu.trace_start"() <{level = 10 : i32, message = "hse,hed->hsd"}> : () -> ()
    %cst = arith.constant dense<0.000000e+00> : vector<4x8x8xf32>
    %6 = tpu.matmul %4, %5, %cst {dimension_numbers = #tpu.dot_dimension_numbers<[2], [1], [1], [2], [0, 0, 0, 1, 1, 2], [0], [0]>} : vector<4x8x32xbf16>, vector<4x32x8xbf16>, vector<4x8x8xf32> -> vector<4x8x8xf32>
    "tpu.trace_stop"() : () -> ()
    %c0_5 = arith.constant 0 : index
    %c0_6 = arith.constant 0 : index
    %c0_7 = arith.constant 0 : index
    %7 = vector.load %arg5[%c0_5, %c0_6, %c0_7] : memref<4x1x8xf32, #tpu.memory_space<vmem>>, vector<4x1x8xf32>
    %8 = vector.broadcast %7 : vector<4x1x8xf32> to vector<4x8x8xf32>
    %9 = arith.addf %6, %8 : vector<4x8x8xf32>
    %c0_8 = arith.constant 0 : index
    %c0_9 = arith.constant 0 : index
    %c0_10 = arith.constant 0 : index
    %10 = vector.load %arg3[%c0_8, %c0_9, %c0_10] : memref<4x32x8xbf16, #tpu.memory_space<vmem>>, vector<4x32x8xbf16>
    "tpu.trace_start"() <{level = 10 : i32, message = "hse,hed->hsd"}> : () -> ()
    %cst_11 = arith.constant dense<0.000000e+00> : vector<4x8x8xf32>
    %11 = tpu.matmul %4, %10, %cst_11 {dimension_numbers = #tpu.dot_dimension_numbers<[2], [1], [1], [2], [0, 0, 0, 1, 1, 2], [0], [0]>} : vector<4x8x32xbf16>, vector<4x32x8xbf16>, vector<4x8x8xf32> -> vector<4x8x8xf32>
    "tpu.trace_stop"() : () -> ()
    %c0_12 = arith.constant 0 : index
    %c0_13 = arith.constant 0 : index
    %c0_14 = arith.constant 0 : index
    %12 = vector.load %arg6[%c0_12, %c0_13, %c0_14] : memref<4x1x8xf32, #tpu.memory_space<vmem>>, vector<4x1x8xf32>
    %13 = vector.broadcast %12 : vector<4x1x8xf32> to vector<4x8x8xf32>
    %14 = arith.addf %11, %13 : vector<4x8x8xf32>
    %c0_15 = arith.constant 0 : index
    %c0_16 = arith.constant 0 : index
    %c0_17 = arith.constant 0 : index
    %15 = vector.load %arg4[%c0_15, %c0_16, %c0_17] : memref<4x32x8xbf16, #tpu.memory_space<vmem>>, vector<4x32x8xbf16>
    "tpu.trace_start"() <{level = 10 : i32, message = "hse,hed->hsd"}> : () -> ()
    %cst_18 = arith.constant dense<0.000000e+00> : vector<4x8x8xf32>
    %16 = tpu.matmul %4, %15, %cst_18 {dimension_numbers = #tpu.dot_dimension_numbers<[2], [1], [1], [2], [0, 0, 0, 1, 1, 2], [0], [0]>} : vector<4x8x32xbf16>, vector<4x32x8xbf16>, vector<4x8x8xf32> -> vector<4x8x8xf32>
    "tpu.trace_stop"() : () -> ()
    %c0_19 = arith.constant 0 : index
    %c0_20 = arith.constant 0 : index
    %c0_21 = arith.constant 0 : index
    %17 = vector.load %arg7[%c0_19, %c0_20, %c0_21] : memref<4x1x8xf32, #tpu.memory_space<vmem>>, vector<4x1x8xf32>
    %18 = vector.broadcast %17 : vector<4x1x8xf32> to vector<4x8x8xf32>
    %19 = arith.addf %16, %18 : vector<4x8x8xf32>
    %cst_22 = arith.constant 0.353553385 : f32
    %20 = vector.broadcast %cst_22 : f32 to vector<4x8x8xf32>
    %21 = arith.mulf %9, %20 : vector<4x8x8xf32>
    %22 = arith.truncf %21 : vector<4x8x8xf32> to vector<4x8x8xbf16>
    %23 = arith.truncf %14 : vector<4x8x8xf32> to vector<4x8x8xbf16>
    %24 = arith.truncf %19 : vector<4x8x8xf32> to vector<4x8x8xbf16>
    "tpu.trace_start"() <{level = 10 : i32, message = "hqd,hkd->hqk"}> : () -> ()
    %cst_23 = arith.constant dense<0.000000e+00> : vector<4x8x8xf32>
    %25 = tpu.matmul %22, %23, %cst_23 {dimension_numbers = #tpu.dot_dimension_numbers<[2], [2], [1], [1], [0, 0, 0, 1, 1, 1], [0], [0]>} : vector<4x8x8xbf16>, vector<4x8x8xbf16>, vector<4x8x8xf32> -> vector<4x8x8xf32>
    "tpu.trace_stop"() : () -> ()
    %cst_24 = arith.constant dense<0xFF800000> : vector<4x8xf32>
    %26 = vector.multi_reduction <maximumf>, %25, %cst_24 [2] : vector<4x8x8xf32> to vector<4x8xf32>
    %27 = vector.shape_cast %26 : vector<4x8xf32> to vector<4x8x1xf32>
    %28 = vector.broadcast %27 : vector<4x8x1xf32> to vector<4x8x8xf32>
    %29 = arith.subf %25, %28 : vector<4x8x8xf32>
    %30 = math.exp %29 : vector<4x8x8xf32>
    %cst_25 = arith.constant dense<0.000000e+00> : vector<4x8xf32>
    %31 = vector.multi_reduction <add>, %30, %cst_25 [2] : vector<4x8x8xf32> to vector<4x8xf32>
    %32 = vector.shape_cast %31 : vector<4x8xf32> to vector<4x8x1xf32>
    %33 = tpu.reciprocal %32 {approx = true} : vector<4x8x1xf32> -> vector<4x8x1xf32>
    %34 = vector.broadcast %33 : vector<4x8x1xf32> to vector<4x8x8xf32>
    %35 = arith.mulf %30, %34 : vector<4x8x8xf32>
    %36 = arith.truncf %35 : vector<4x8x8xf32> to vector<4x8x8xbf16>
    "tpu.trace_start"() <{level = 10 : i32, message = "hqk,hkd->hqd"}> : () -> ()
    %cst_26 = arith.constant dense<0.000000e+00> : vector<4x8x8xf32>
    %37 = tpu.matmul %36, %24, %cst_26 {dimension_numbers = #tpu.dot_dimension_numbers<[2], [1], [1], [2], [0, 0, 0, 1, 1, 2], [0], [0]>} : vector<4x8x8xbf16>, vector<4x8x8xbf16>, vector<4x8x8xf32> -> vector<4x8x8xf32>
    "tpu.trace_stop"() : () -> ()
    %38 = arith.truncf %37 : vector<4x8x8xf32> to vector<4x8x8xbf16>
    %c0_27 = arith.constant 0 : index
    %c0_28 = arith.constant 0 : index
    %c0_29 = arith.constant 0 : index
    %39 = vector.load %arg8[%c0_27, %c0_28, %c0_29] : memref<4x8x32xbf16, #tpu.memory_space<vmem>>, vector<4x8x32xbf16>
    "tpu.trace_start"() <{level = 10 : i32, message = "hsd,hde->hse"}> : () -> ()
    %cst_30 = arith.constant dense<0.000000e+00> : vector<4x8x32xf32>
    %40 = tpu.matmul %38, %39, %cst_30 {dimension_numbers = #tpu.dot_dimension_numbers<[2], [1], [1], [2], [0, 0, 0, 1, 1, 2], [0], [0]>} : vector<4x8x8xbf16>, vector<4x8x32xbf16>, vector<4x8x32xf32> -> vector<4x8x32xf32>
    "tpu.trace_stop"() : () -> ()
    %cst_31 = arith.constant dense<0.000000e+00> : vector<8x32xf32>
    %41 = vector.multi_reduction <add>, %40, %cst_31 [0] : vector<4x8x32xf32> to vector<8x32xf32>
    %c0_32 = arith.constant 0 : index
    %c0_33 = arith.constant 0 : index
    %42 = vector.load %arg9[%c0_32, %c0_33] : memref<1x32xf32, #tpu.memory_space<vmem>>, vector<1x32xf32>
    %43 = vector.broadcast %42 : vector<1x32xf32> to vector<8x32xf32>
    %44 = arith.addf %41, %43 : vector<8x32xf32>
    %45 = arith.addf %1, %44 : vector<8x32xf32>
    %c0_34 = arith.constant 0 : index
    %c0_35 = arith.constant 0 : index
    %46 = vector.load %arg10[%c0_34, %c0_35] : memref<1x32xf32, #tpu.memory_space<vmem>>, vector<1x32xf32>
    %c0_36 = arith.constant 0 : index
    %c0_37 = arith.constant 0 : index
    %47 = vector.load %arg11[%c0_36, %c0_37] : memref<1x32xf32, #tpu.memory_space<vmem>>, vector<1x32xf32>
    %cst_38 = arith.constant dense<0.000000e+00> : vector<8xf32>
    %48 = vector.multi_reduction <add>, %45, %cst_38 [1] : vector<8x32xf32> to vector<8xf32>
    %49 = vector.shape_cast %48 : vector<8xf32> to vector<8x1xf32>
    %cst_39 = arith.constant 3.200000e+01 : f32
    %50 = vector.broadcast %cst_39 : f32 to vector<8x1xf32>
    %51 = arith.divf %49, %50 : vector<8x1xf32>
    %52 = vector.broadcast %51 : vector<8x1xf32> to vector<8x32xf32>
    %53 = arith.subf %45, %52 : vector<8x32xf32>
    %54 = arith.mulf %53, %53 : vector<8x32xf32>
    %cst_40 = arith.constant dense<0.000000e+00> : vector<8xf32>
    %55 = vector.multi_reduction <add>, %54, %cst_40 [1] : vector<8x32xf32> to vector<8xf32>
    %56 = vector.shape_cast %55 : vector<8xf32> to vector<8x1xf32>
    %cst_41 = arith.constant 3.200000e+01 : f32
    %57 = vector.broadcast %cst_41 : f32 to vector<8x1xf32>
    %58 = arith.divf %56, %57 : vector<8x1xf32>
    %59 = vector.broadcast %51 : vector<8x1xf32> to vector<8x32xf32>
    %60 = arith.subf %45, %59 : vector<8x32xf32>
    %cst_42 = arith.constant 9.99999974E-6 : f32
    %61 = vector.broadcast %cst_42 : f32 to vector<8x1xf32>
    %62 = arith.addf %58, %61 : vector<8x1xf32>
    %63 = math.rsqrt %62 : vector<8x1xf32>
    %64 = vector.broadcast %63 : vector<8x1xf32> to vector<8x32xf32>
    %65 = arith.mulf %60, %64 : vector<8x32xf32>
    %66 = vector.broadcast %46 : vector<1x32xf32> to vector<8x32xf32>
    %67 = arith.mulf %65, %66 : vector<8x32xf32>
    %68 = vector.broadcast %47 : vector<1x32xf32> to vector<8x32xf32>
    %69 = arith.addf %67, %68 : vector<8x32xf32>
    %70 = arith.truncf %69 : vector<8x32xf32> to vector<8x32xbf16>
    %c0_43 = arith.constant 0 : index
    %c0_44 = arith.constant 0 : index
    %71 = vector.load %arg14[%c0_43, %c0_44] : memref<32x64xbf16, #tpu.memory_space<vmem>>, vector<32x64xbf16>
    %cst_45 = arith.constant dense<0.000000e+00> : vector<8x64xf32>
    %72 = tpu.matmul %70, %71, %cst_45 {dimension_numbers = #tpu.dot_dimension_numbers<[1], [0], [0], [1], [0, 0, 1, 1], [], []>} : vector<8x32xbf16>, vector<32x64xbf16>, vector<8x64xf32> -> vector<8x64xf32>
    %c0_46 = arith.constant 0 : index
    %c0_47 = arith.constant 0 : index
    %73 = vector.load %arg15[%c0_46, %c0_47] : memref<1x64xf32, #tpu.memory_space<vmem>>, vector<1x64xf32>
    %74 = vector.broadcast %73 : vector<1x64xf32> to vector<8x64xf32>
    %75 = arith.addf %72, %74 : vector<8x64xf32>
    %cst_48 = arith.constant 0.000000e+00 : f32
    %76 = vector.broadcast %cst_48 : f32 to vector<8x64xf32>
    %77 = arith.maximumf %75, %76 : vector<8x64xf32>
    %78 = arith.truncf %77 : vector<8x64xf32> to vector<8x64xbf16>
    %c0_49 = arith.constant 0 : index
    %c0_50 = arith.constant 0 : index
    %79 = vector.load %arg16[%c0_49, %c0_50] : memref<64x32xbf16, #tpu.memory_space<vmem>>, vector<64x32xbf16>
    %cst_51 = arith.constant dense<0.000000e+00> : vector<8x32xf32>
    %80 = tpu.matmul %78, %79, %cst_51 {dimension_numbers = #tpu.dot_dimension_numbers<[1], [0], [0], [1], [0, 0, 1, 1], [], []>} : vector<8x64xbf16>, vector<64x32xbf16>, vector<8x32xf32> -> vector<8x32xf32>
    %c0_52 = arith.constant 0 : index
    %c0_53 = arith.constant 0 : index
    %81 = vector.load %arg17[%c0_52, %c0_53] : memref<1x32xf32, #tpu.memory_space<vmem>>, vector<1x32xf32>
    %82 = vector.broadcast %81 : vector<1x32xf32> to vector<8x32xf32>
    %83 = arith.addf %80, %82 : vector<8x32xf32>
    %84 = arith.addf %69, %83 : vector<8x32xf32>
    %c0_54 = arith.constant 0 : index
    %c0_55 = arith.constant 0 : index
    %85 = vector.load %arg12[%c0_54, %c0_55] : memref<1x32xf32, #tpu.memory_space<vmem>>, vector<1x32xf32>
    %c0_56 = arith.constant 0 : index
    %c0_57 = arith.constant 0 : index
    %86 = vector.load %arg13[%c0_56, %c0_57] : memref<1x32xf32, #tpu.memory_space<vmem>>, vector<1x32xf32>
    %cst_58 = arith.constant dense<0.000000e+00> : vector<8xf32>
    %87 = vector.multi_reduction <add>, %84, %cst_58 [1] : vector<8x32xf32> to vector<8xf32>
    %88 = vector.shape_cast %87 : vector<8xf32> to vector<8x1xf32>
    %cst_59 = arith.constant 3.200000e+01 : f32
    %89 = vector.broadcast %cst_59 : f32 to vector<8x1xf32>
    %90 = arith.divf %88, %89 : vector<8x1xf32>
    %91 = vector.broadcast %90 : vector<8x1xf32> to vector<8x32xf32>
    %92 = arith.subf %84, %91 : vector<8x32xf32>
    %93 = arith.mulf %92, %92 : vector<8x32xf32>
    %cst_60 = arith.constant dense<0.000000e+00> : vector<8xf32>
    %94 = vector.multi_reduction <add>, %93, %cst_60 [1] : vector<8x32xf32> to vector<8xf32>
    %95 = vector.shape_cast %94 : vector<8xf32> to vector<8x1xf32>
    %cst_61 = arith.constant 3.200000e+01 : f32
    %96 = vector.broadcast %cst_61 : f32 to vector<8x1xf32>
    %97 = arith.divf %95, %96 : vector<8x1xf32>
    %98 = vector.broadcast %90 : vector<8x1xf32> to vector<8x32xf32>
    %99 = arith.subf %84, %98 : vector<8x32xf32>
    %cst_62 = arith.constant 9.99999974E-6 : f32
    %100 = vector.broadcast %cst_62 : f32 to vector<8x1xf32>
    %101 = arith.addf %97, %100 : vector<8x1xf32>
    %102 = math.rsqrt %101 : vector<8x1xf32>
    %103 = vector.broadcast %102 : vector<8x1xf32> to vector<8x32xf32>
    %104 = arith.mulf %99, %103 : vector<8x32xf32>
    %105 = vector.broadcast %85 : vector<1x32xf32> to vector<8x32xf32>
    %106 = arith.mulf %104, %105 : vector<8x32xf32>
    %107 = vector.broadcast %86 : vector<1x32xf32> to vector<8x32xf32>
    %108 = arith.addf %106, %107 : vector<8x32xf32>
    %c0_63 = arith.constant 0 : index
    %c0_64 = arith.constant 0 : index
    %c0_65 = arith.constant 0 : index
    %109 = vector.load %arg18[%c0_63, %c0_64, %c0_65] : memref<1x8x32xf32, #tpu.memory_space<vmem>>, vector<1x8x32xf32>
    %110 = vector.shape_cast %109 : vector<1x8x32xf32> to vector<8x32xf32>
    %111 = vector.shape_cast %108 : vector<8x32xf32> to vector<1x8x32xf32>
    tpu.vector_store %arg18[%c0_63, %c0_64, %c0_65], %111 {strides = array<i32>} : memref<1x8x32xf32, #tpu.memory_space<vmem>>, vector<1x8x32xf32>,
    return
  }
  func.func @transform_0(%arg0: i32) -> (i32, i32, i32) {
    %c0_i32 = arith.constant 0 : i32
    %c0_i32_0 = arith.constant 0 : i32
    %c0_i32_1 = arith.constant 0 : i32
    return %arg0, %c0_i32, %c0_i32_0 : i32, i32, i32
  }
  func.func @transform_1(%arg0: i32) -> (i32, i32, i32) {
    %c0_i32 = arith.constant 0 : i32
    %c0_i32_0 = arith.constant 0 : i32
    %c0_i32_1 = arith.constant 0 : i32
    %c0_i32_2 = arith.constant 0 : i32
    return %c0_i32, %c0_i32_0, %c0_i32_1 : i32, i32, i32
  }
  func.func @transform_2(%arg0: i32) -> (i32, i32, i32) {
    %c0_i32 = arith.constant 0 : i32
    %c0_i32_0 = arith.constant 0 : i32
    %c0_i32_1 = arith.constant 0 : i32
    %c0_i32_2 = arith.constant 0 : i32
    return %c0_i32, %c0_i32_0, %c0_i32_1 : i32, i32, i32
  }
  func.func @transform_3(%arg0: i32) -> (i32, i32, i32) {
    %c0_i32 = arith.constant 0 : i32
    %c0_i32_0 = arith.constant 0 : i32
    %c0_i32_1 = arith.constant 0 : i32
    %c0_i32_2 = arith.constant 0 : i32
    return %c0_i32, %c0_i32_0, %c0_i32_1 : i32, i32, i32
  }
  func.func @transform_4(%arg0: i32) -> (i32, i32, i32) {
    %c0_i32 = arith.constant 0 : i32
    %c0_i32_0 = arith.constant 0 : i32
    %c0_i32_1 = arith.constant 0 : i32
    %c0_i32_2 = arith.constant 0 : i32
    return %c0_i32, %c0_i32_0, %c0_i32_1 : i32, i32, i32
  }
  func.func @transform_5(%arg0: i32) -> (i32, i32, i32) {
    %c0_i32 = arith.constant 0 : i32
    %c0_i32_0 = arith.constant 0 : i32
    %c0_i32_1 = arith.constant 0 : i32
    %c0_i32_2 = arith.constant 0 : i32
    return %c0_i32, %c0_i32_0, %c0_i32_1 : i32, i32, i32
  }
  func.func @transform_6(%arg0: i32) -> (i32, i32, i32) {
    %c0_i32 = arith.constant 0 : i32
    %c0_i32_0 = arith.constant 0 : i32
    %c0_i32_1 = arith.constant 0 : i32
    %c0_i32_2 = arith.constant 0 : i32
    return %c0_i32, %c0_i32_0, %c0_i32_1 : i32, i32, i32
  }
  func.func @transform_7(%arg0: i32) -> (i32, i32, i32) {
    %c0_i32 = arith.constant 0 : i32
    %c0_i32_0 = arith.constant 0 : i32
    %c0_i32_1 = arith.constant 0 : i32
    %c0_i32_2 = arith.constant 0 : i32
    return %c0_i32, %c0_i32_0, %c0_i32_1 : i32, i32, i32
  }
  func.func @transform_8(%arg0: i32) -> (i32, i32) {
    %c0_i32 = arith.constant 0 : i32
    %c0_i32_0 = arith.constant 0 : i32
    %c0_i32_1 = arith.constant 0 : i32
    return %c0_i32, %c0_i32_0 : i32, i32
  }
  func.func @transform_9(%arg0: i32) -> (i32, i32) {
    %c0_i32 = arith.constant 0 : i32
    %c0_i32_0 = arith.constant 0 : i32
    %c0_i32_1 = arith.constant 0 : i32
    return %c0_i32, %c0_i32_0 : i32, i32
  }
  func.func @transform_10(%arg0: i32) -> (i32, i32) {
    %c0_i32 = arith.constant 0 : i32
    %c0_i32_0 = arith.constant 0 : i32
    %c0_i32_1 = arith.constant 0 : i32
    return %c0_i32, %c0_i32_0 : i32, i32
  }
  func.func @transform_11(%arg0: i32) -> (i32, i32) {
    %c0_i32 = arith.constant 0 : i32
    %c0_i32_0 = arith.constant 0 : i32
    %c0_i32_1 = arith.constant 0 : i32
    return %c0_i32, %c0_i32_0 : i32, i32
  }
  func.func @transform_12(%arg0: i32) -> (i32, i32) {
    %c0_i32 = arith.constant 0 : i32
    %c0_i32_0 = arith.constant 0 : i32
    %c0_i32_1 = arith.constant 0 : i32
    return %c0_i32, %c0_i32_0 : i32, i32
  }
  func.func @transform_13(%arg0: i32) -> (i32, i32) {
    %c0_i32 = arith.constant 0 : i32
    %c0_i32_0 = arith.constant 0 : i32
    %c0_i32_1 = arith.constant 0 : i32
    return %c0_i32, %c0_i32_0 : i32, i32
  }
  func.func @transform_14(%arg0: i32) -> (i32, i32) {
    %c0_i32 = arith.constant 0 : i32
    %c0_i32_0 = arith.constant 0 : i32
    %c0_i32_1 = arith.constant 0 : i32
    return %c0_i32, %c0_i32_0 : i32, i32
  }
  func.func @transform_15(%arg0: i32) -> (i32, i32) {
    %c0_i32 = arith.constant 0 : i32
    %c0_i32_0 = arith.constant 0 : i32
    %c0_i32_1 = arith.constant 0 : i32
    return %c0_i32, %c0_i32_0 : i32, i32
  }
  func.func @transform_16(%arg0: i32) -> (i32, i32) {
    %c0_i32 = arith.constant 0 : i32
    %c0_i32_0 = arith.constant 0 : i32
    %c0_i32_1 = arith.constant 0 : i32
    return %c0_i32, %c0_i32_0 : i32, i32
  }
  func.func @transform_17(%arg0: i32) -> (i32, i32, i32) {
    %c0_i32 = arith.constant 0 : i32
    %c0_i32_0 = arith.constant 0 : i32
    %c0_i32_1 = arith.constant 0 : i32
    return %arg0, %c0_i32, %c0_i32_0 : i32, i32, i32
  }
}

</mosaic_0001>

<bundles_post_ra>
// kernel: encoder_forward.1
= control target key start
LH: loop header
LB: loop body
LE: loop exit
PB: predicated region body
PF: predicated region fallthrough
CT: control target
= control target key end

     0   :  { %s3256_s0 = inlined_call_operand.vmem [shape: f32[2,8,32], index: 0, kind: input, shape index: {}]   ;;  %s3257_s1 = inlined_call_operand.vmem [shape: bf16[4,32,8], index: 1, kind: input, shape index: {}]   ;;  %s3258_s2 = inlined_call_operand.vmem [shape: bf16[4,32,8], index: 2, kind: input, shape index: {}]   ;;  %s3259_s3 = inlined_call_operand.vmem [shape: bf16[4,32,8], index: 3, kind: input, shape index: {}]   ;;  %s3260_s4 = inlined_call_operand.vmem [shape: f32[4,1,8], index: 4, kind: input, shape index: {}]   ;;  %s3261_s5 = inlined_call_operand.vmem [shape: f32[4,1,8], index: 5, kind: input, shape index: {}]   ;;  %s3262_s6 = inlined_call_operand.vmem [shape: f32[4,1,8], index: 6, kind: input, shape index: {}]   ;;  %s3263_s7 = inlined_call_operand.vmem [shape: bf16[4,8,32], index: 7, kind: input, shape index: {}]   ;;  %s3264_s8 = inlined_call_operand.vmem [shape: f32[1,32], index: 8, kind: input, shape index: {}]   ;;  %s3265_s9 = inlined_call_operand.vmem [shape: f32[1,32], index: 9, kind: input, shape index: {}]   ;;  %s3266_s10 = inlined_call_operand.vmem [shape: f32[1,32], index: 10, kind: input, shape index: {}]   ;;  %s3267_s11 = inlined_call_operand.vmem [shape: f32[1,32], index: 11, kind: input, shape index: {}]   ;;  %s3268_s12 = inlined_call_operand.vmem [shape: f32[1,32], index: 12, kind: input, shape index: {}]   ;;  %s3269_s13 = inlined_call_operand.vmem [shape: bf16[32,64], index: 13, kind: input, shape index: {}]   ;;  %s3270_s14 = inlined_call_operand.vmem [shape: f32[1,64], index: 14, kind: input, shape index: {}]   ;;  %s3271_s15 = inlined_call_operand.vmem [shape: bf16[64,32], index: 15, kind: input, shape index: {}]   ;;  %s3272_s16 = inlined_call_operand.vmem [shape: f32[1,32], index: 16, kind: input, shape index: {}]   ;;  %s3273_s17 = inlined_call_operand.hbm [shape: f32[2,8,32], index: 17, kind: output, shape index: {}]  }
   0x1   :  { %3280 = sst [smem:[#allocation10_spill]] %s3256_s0 }
   0x2   :  { %3281 = sst [smem:[#allocation11_spill]] %s3257_s1 }
   0x3   :  { %3282 = sst [smem:[#allocation12_spill]] %s3258_s2 }
   0x4   :  { %3283 = sst [smem:[#allocation13_spill]] %s3259_s3 }
   0x5   :  { %22 = vsyncpa [#allocation3], 0 }
   0x6   :  { %24 = vsyncpa [#allocation3 + $0x1], 0  ;;  %s2824_s24 = smov 0   ;;  %s2826_s25 = smov 0  }
   0x7   :  { %s2828_s26 = smov 0   ;;  %s2830_s27 = smov 0  }
   0x8 LB: > { %3284 = sst [smem:[#allocation5_spill]] %s2717_s24  ;;  %s2845_s28 = sadd.s32 4294967295, %s2729_s27   ;;  %s2729_s27 = sphi %s2830_s27, %s3297_s27   ;;  %s2725_s26 = sphi %s2828_s26, %s3299_s26   ;;  %s2721_s25 = sphi %s2826_s25, %s3301_s25   ;;  %s2717_s24 = sphi %s2824_s24, %s3300_s24  }
   0x9   : > { %3285 = sst [smem:[#allocation6_spill]] %s2725_s26  ;;  %s2235_s29 = sadd.s32 4294967294, %s2729_s27  }
   0xa   : > { %s2849_s0 = sadd.s32 1, %s2729_s27   ;;  %s399_s30 = sadd.s32 1, %s2725_s26 }
   0xb   : > { %3286 = sst [smem:[#allocation7_spill]] %s2849_s0  ;;  %s396_s18 = ssub.s32 %s2729_s27, %s2849_s0 }
   0xc   : > { %p409_p0 = scmp.ne.s32.totalorder %s2725_s26, %s2721_s25  ;;  %p397_p1 = scmp.eq.s32.totalorder %s396_s18, 0 }
   0xd   : > { %p410_p2 = scmp.eq.s32.totalorder %s2845_s28, 1  ;;  %p415_p3 = scmp.ne.s32.totalorder %s2721_s25, %s2717_s24 }
   0xe   : > { %p416_p4 = scmp.eq.s32.totalorder %s2235_s29, 1  ;;  %p2238_p7 = scmp.ge.s32.totalorder %s2729_s27, 1 }
   0xf   : > { %s2860_s19 = scalar_select %p397_p1, %s2725_s26, %s399_s30  }
  0x10   : > { %p2862_p5 = por %p410_p2, %p409_p0  ;;  %p2866_p6 = por %p416_p4, %p415_p3 }
  0x11   : > { %3287 = sst [smem:[#allocation8_spill]] %s2860_s19  ;;  %p489_p8 = scmp.lt.s32.totalorder %s2729_s27, 3 }
  0x12   : > { %s3289_s20 = scalar_select %p2866_p6, 1, 0 }
  0x13   : > { %p490_p9 = pnand %p2238_p7, %p489_p8 }
  0x14   : > { %3290 = sst [smem:[#allocation9_spill]] %s3289_s20  ;;  %s3291_s23 = sld [smem:[#allocation11_spill]] (!%p490_p9)  ;;  %v2731_v1 = vmov (!%p490_p9), 0.0   ;;  %vm2732_vm0 = vmmov (!%p490_p9), 0   ;;  %vm603_vm1 = vcmask (!%p490_p9), 261120   ;;  %vm1323_vm2 = vcmask (!%p490_p9), 64512  }
  0x15   : > { %493 = sbr.rel (%p490_p9) target bundleno = 2324 (0x914), region = 88  ;;  %2388 = vmatprep.subr.bf16.mxu0 (!%p490_p9), %v2731_v1  ;;  %2396 = vmatprep.subr.bf16.mxu1 (!%p490_p9), %v2731_v1  ;;  %p540_p10 = scmp.lt.s32.totalorder (!%p490_p9), %s2845_s28, 1  ;;  %v2257_v43 = vld [vmem:[%s3261_s5] ss:$0 sm:$0xff] (!%p490_p9)  ;;  %v2258_v44 = vld [vmem:[%s3261_s5 + $0x1] ss:$0 sm:$0xff] (!%p490_p9) }
  0x16   : > { %2392 = vmatprep.mubr.msk.bf16.mxu0 (!%p490_p9), %vm2732_vm0, %v2731_v1  ;;  %2400 = vmatprep.mubr.msk.bf16.mxu1 (!%p490_p9), %vm2732_vm0, %v2731_v1  ;;  %s3292_s20 = sld [smem:[#allocation10_spill]] (!%p490_p9)  ;;  %s3293_s2 = sld [smem:[#allocation12_spill]] (!%p490_p9)  ;;  %v2241_v45 = vld [vmem:[%s3260_s4] ss:$0 sm:$0xff] (!%p490_p9)  ;;  %v2242_v46 = vld [vmem:[%s3260_s4 + $0x1] ss:$0 sm:$0xff] (!%p490_p9) }
  0x17   : > { %s3294_s3 = sld [smem:[#allocation13_spill]] (!%p490_p9)  ;;  %v2259_v63 = vld [vmem:[%s3261_s5 + $0x2] ss:$0 sm:$0xff] (!%p490_p9)  ;;  %vm1559_vm3 = vcmask (!%p490_p9), 1043456   ;;  %vm2087_vm4 = vcmask (!%p490_p9), 523264   ;;  %s537_s26 = sand.u32 (!%p490_p9), 1, %s2721_s25  }
  0x18   : > { %s2239_s0 = sshll.u32 (!%p490_p9), %s537_s26, 3  ;;  %s2317_s30 = sshll.u32 (!%p490_p9), %s2845_s28, 7 }
  0x19   : > { %s539_s18 = scalar_lea.vmem (!%p490_p9), [#allocation2], %s2239_s0 }
  0x1a   : > { %v2617_v0 = vld [vmem:[%s3291_s23] sm:$0xff] (!%p490_p9)   ;;  %v2618_v2 = vld [vmem:[%s3291_s23 + $0x10] sm:$0xff] (!%p490_p9)   ;;  %v2619_v3 = vld [vmem:[%s3291_s23 + $0x8] sm:$0xff] (!%p490_p9)   ;;  %s2176_s21 = sshll.u32 (!%p490_p9), %s539_s18, 4  ;;  %s3215_s21 = int_to_ptr.vmem [resolvable:$true] %s2176_s21 }
  0x1b   : > { %2389 = vmatpush3.bf16.msra.mxu0 (!%p490_p9), %v2617_v0  ;;  %2397 = vmatpush3.bf16.msra.mxu1 (!%p490_p9), %v2618_v2  ;;  %v2620_v4 = vld [vmem:[%s3291_s23 + $0x18] sm:$0xff] (!%p490_p9)   ;;  %v2621_v5 = vld [vmem:[%s3291_s23 + $0x20] sm:$0xff] (!%p490_p9)   ;;  %v2622_v6 = vld [vmem:[%s3291_s23 + $0x30] sm:$0xff] (!%p490_p9)  }
  0x1c   : > { %2390 = vmatprep.subr.bf16.mxu0 %v2731_v1  ;;  %2398 = vmatprep.subr.bf16.mxu1 %v2731_v1  ;;  %s541_s29 = scalar_select %p540_p10, %s2845_s28, 1  ;;  %v2623_v9 = vld [vmem:[%s3291_s23 + $0x28] sm:$0xff]   ;;  %v2624_v10 = vld [vmem:[%s3291_s23 + $0x38] sm:$0xff]   ;;  %v2625_v11 = vld [vmem:[%s3293_s2] sm:$0xff]  }
  0x1d   : > { %v2626_v12 = vld [vmem:[%s3293_s2 + $0x10] sm:$0xff]   ;;  %v2627_v13 = vld [vmem:[%s3293_s2 + $0x8] sm:$0xff]   ;;  %v2628_v14 = vld [vmem:[%s3293_s2 + $0x18] sm:$0xff]   ;;  %s2733_s28 = smov [#allocation2]  }
  0x1e   : > { %s2240_s19 = sshll.u32 %s541_s29, 3  ;;  %v2629_v15 = vld [vmem:[%s3293_s2 + $0x20] sm:$0xff]   ;;  %v2630_v16 = vld [vmem:[%s3293_s2 + $0x30] sm:$0xff]   ;;  %v2631_v17 = vld [vmem:[%s3293_s2 + $0x28] sm:$0xff]   ;;  %s2671_s0 = sshll.u32 %s2733_s28, 4  ;;  %s2672_s0 = int_to_ptr.vmem [resolvable:$false] %s2671_s0 }
  0x1f   : > { %2391 = vmatpush3.bf16.msra.mxu0 %v2619_v3  ;;  %2399 = vmatpush3.bf16.msra.mxu1 %v2620_v4  ;;  %s543_s24 = scalar_lea.vmem %s3292_s20, %s2240_s19  ;;  %v2632_v18 = vld [vmem:[%s3293_s2 + $0x38] sm:$0xff]   ;;  %v2633_v19 = vld [vmem:[%s3294_s3] sm:$0xff]   ;;  %v2634_v20 = vld [vmem:[%s3294_s3 + $0x10] sm:$0xff]   ;;  %s2667_s20 = scalar_lea.vmem %s3215_s21, 128 }
  0x20   : > { %2404 = vmatprep.subr.bf16.mxu0 %v2731_v1  ;;  %v2904_v7 = vld [vmem:[%s543_s24] sm:$0xff]  ;;  %2412 = vmatprep.subr.bf16.mxu1 %v2731_v1  ;;  %v2635_v21 = vld [vmem:[%s3294_s3 + $0x8] sm:$0xff]   ;;  %v2636_v22 = vld [vmem:[%s3294_s3 + $0x18] sm:$0xff]   ;;  %s2163_s24 = scalar_lea.sflag [#allocation3], %s537_s26  ;;  %p2668_p11 = scmp.ne.s32.totalorder %s3215_s21, %s2667_s20 }
  0x21   : > { %v2909_v8 = vpack.c.bf16 %v2904_v7, %v2904_v7  ;;  %v2637_v23 = vld [vmem:[%s3294_s3 + $0x20] sm:$0xff]   ;;  %v2638_v24 = vld [vmem:[%s3294_s3 + $0x30] sm:$0xff]   ;;  %v2639_v25 = vld [vmem:[%s3294_s3 + $0x28] sm:$0xff]   ;;  %s2673_s29 = scalar_lea.vmem %s2672_s0, 256  ;;  %p2674_p0 = scmp.lt.s32.totalorder %s3215_s21, %s2672_s0 }
  0x22   : > { %v2640_v26 = vld [vmem:[%s3294_s3 + $0x38] sm:$0xff]   ;;  %v2260_v3 = vld [vmem:[%s3261_s5 + $0x3] ss:$0 sm:$0xff]  ;;  %v2243_v4 = vld [vmem:[%s3260_s4 + $0x2] ss:$0 sm:$0xff]  ;;  %s3213_s3 = scalar_lea.hbm %s3273_s17, %s2317_s30  ;;  %p2669_p12 = pnand %p2668_p11, %p2862_p5 }
  0x23   : > { %2393 = vmatmul.mubr.msk.bf16.vlgmr.msra.gmra.mrb[0].mxu0 %vm603_vm1, %v2909_v8  ;;  %2401 = vmatmul.mubr.msk.bf16.vlgmr.msra.gmra.mrb[0].mxu1 %vm603_vm1, %v2909_v8  ;;  %p2675_p1 = scmp.lt.s32.totalorder %s2673_s29, %s2667_s20 }
  0x24   : > { %2405 = vmatpush3.bf16.msra.mxu0 %v2621_v5  ;;  %2413 = vmatpush3.bf16.msra.mxu1 %v2622_v6  ;;  %v2244_v5 = vld [vmem:[%s3260_s4 + $0x3] ss:$0 sm:$0xff]  ;;  %p2670_p13 = pneg %p2669_p12 }
  0x25   : > { %2406 = vmatprep.subr.bf16.mxu0 %v2731_v1  ;;  %2414 = vmatprep.subr.bf16.mxu1 %v2731_v1  ;;  %p2676_p2 = por %p2675_p1, %p2674_p0 }
  0x26   : > { %2408 = vmatprep.mubr.msk.bf16.mxu0 %vm2732_vm0, %v2731_v1  ;;  %2416 = vmatprep.mubr.msk.bf16.mxu1 %vm2732_vm0, %v2731_v1 }
  0x27   : > { %p2677_p3 = pnand %p2676_p2, %p2670_p13 }
  0x28   : > { %2407 = vmatpush3.bf16.msra.mxu0 %v2623_v9  ;;  %2415 = vmatpush3.bf16.msra.mxu1 %v2624_v10 }
  0x29   : > { %2420 = vmatprep.subr.bf16.mxu0 %v2731_v1  ;;  %2428 = vmatprep.subr.bf16.mxu1 %v2731_v1 }
  0x2b   : > { %2409 = vmatmul.mubr.msk.bf16.vlgmr.msra.gmra.mrb[4].mxu0 %vm603_vm1, %v2909_v8  ;;  %2417 = vmatmul.mubr.msk.bf16.vlgmr.msra.gmra.mrb[4].mxu1 %vm603_vm1, %v2909_v8 }
  0x2c   : > { %2421 = vmatpush3.bf16.msra.mxu0 %v2625_v11  ;;  %2429 = vmatpush3.bf16.msra.mxu1 %v2626_v12 }
  0x2d   : > { %2422 = vmatprep.subr.bf16.mxu0 %v2731_v1  ;;  %2430 = vmatprep.subr.bf16.mxu1 %v2731_v1 }
  0x2e   : > { %2424 = vmatprep.mubr.msk.bf16.mxu0 %vm2732_vm0, %v2731_v1  ;;  %2432 = vmatprep.mubr.msk.bf16.mxu1 %vm2732_vm0, %v2731_v1 }
  0x30   : > { %2423 = vmatpush3.bf16.msra.mxu0 %v2627_v13  ;;  %2431 = vmatpush3.bf16.msra.mxu1 %v2628_v14 }
  0x31   : > { %2436 = vmatprep.subr.bf16.mxu0 %v2731_v1  ;;  %2444 = vmatprep.subr.bf16.mxu1 %v2731_v1 }
  0x33   : > { %2425 = vmatmul.mubr.msk.bf16.vlgmr.msra.gmra.mrb[8].mxu0 %vm603_vm1, %v2909_v8  ;;  %2433 = vmatmul.mubr.msk.bf16.vlgmr.msra.gmra.mrb[8].mxu1 %vm603_vm1, %v2909_v8 }
  0x34   : > { %2437 = vmatpush3.bf16.msra.mxu0 %v2629_v15  ;;  %2445 = vmatpush3.bf16.msra.mxu1 %v2630_v16 }
  0x35   : > { %2438 = vmatprep.subr.bf16.mxu0 %v2731_v1  ;;  %2446 = vmatprep.subr.bf16.mxu1 %v2731_v1 }
  0x36   : > { %2440 = vmatprep.mubr.msk.bf16.mxu0 %vm2732_vm0, %v2731_v1  ;;  %2448 = vmatprep.mubr.msk.bf16.mxu1 %vm2732_vm0, %v2731_v1 }
  0x38   : > { %2439 = vmatpush3.bf16.msra.mxu0 %v2631_v17  ;;  %2447 = vmatpush3.bf16.msra.mxu1 %v2632_v18 }
  0x39   : > { %2452 = vmatprep.subr.bf16.mxu0 %v2731_v1  ;;  %2460 = vmatprep.subr.bf16.mxu1 %v2731_v1 }
  0x3b   : > { %2441 = vmatmul.mubr.msk.bf16.vlgmr.msra.gmra.mrb[12].mxu0 %vm603_vm1, %v2909_v8  ;;  %2449 = vmatmul.mubr.msk.bf16.vlgmr.msra.gmra.mrb[12].mxu1 %vm603_vm1, %v2909_v8 }
  0x3c   : > { %2453 = vmatpush3.bf16.msra.mxu0 %v2633_v19  ;;  %2456 = vmatprep.mubr.msk.bf16.mxu0 %vm2732_vm0, %v2731_v1 }
  0x3d   : > { %2454 = vmatprep.subr.bf16.mxu0 %v2731_v1  ;;  %2464 = vmatprep.mubr.msk.bf16.mxu1 %vm2732_vm0, %v2731_v1 }
  0x3e   : > { %2461 = vmatpush3.bf16.msra.mxu1 %v2634_v20 }
  0x3f   : > { %2462 = vmatprep.subr.bf16.mxu1 %v2731_v1 }
  0x40   : > { %2455 = vmatpush3.bf16.msra.mxu0 %v2635_v21 }
  0x41   : > { %2468 = vmatprep.subr.bf16.mxu0 %v2731_v1 }
  0x42   : > { %2463 = vmatpush3.bf16.msra.mxu1 %v2636_v22 }
  0x43   : > { %2457 = vmatmul.mubr.msk.bf16.vlgmr.msra.gmra.mrb[16].mxu0 %vm603_vm1, %v2909_v8  ;;  %2476 = vmatprep.subr.bf16.mxu1 %v2731_v1 }
  0x44   : > { %2472 = vmatprep.mubr.msk.bf16.mxu0 %vm2732_vm0, %v2731_v1  ;;  %2469 = vmatpush3.bf16.msra.mxu0 %v2637_v23 }
  0x45   : > { %2465 = vmatmul.mubr.msk.bf16.vlgmr.msra.gmra.mrb[16].mxu1 %vm603_vm1, %v2909_v8  ;;  %2470 = vmatprep.subr.bf16.mxu0 %v2731_v1 }
  0x46   : > { %2477 = vmatpush3.bf16.msra.mxu1 %v2638_v24  ;;  %2480 = vmatprep.mubr.msk.bf16.mxu1 %vm2732_vm0, %v2731_v1 }
  0x47   : > { %2478 = vmatprep.subr.bf16.mxu1 %v2731_v1 }
  0x48   : > { %2471 = vmatpush3.bf16.msra.mxu0 %v2639_v25 }
  0x49   : > { %2484 = vmatprep.subr.bf16.mxu0 %v2731_v1 }
  0x4a   : > { %2479 = vmatpush3.bf16.msra.mxu1 %v2640_v26 }
  0x4b   : > { %2490 = vmatprep.subr.bf16.mxu1 %v2731_v1  ;;  %2473 = vmatmul.mubr.msk.bf16.vlgmr.msra.gmra.mrb[20].mxu0 %vm603_vm1, %v2909_v8 }
  0x4c   : > { %2486 = vmatprep.mubr.msk.bf16.mxu0 %vm2732_vm0, %v2731_v1 }
  0x4d   : > { %2481 = vmatmul.mubr.msk.bf16.vlgmr.msra.gmra.mrb[20].mxu1 %vm603_vm1, %v2909_v8 }
  0x4e   : > { %2492 = vmatprep.mubr.msk.bf16.mxu1 %vm2732_vm0, %v2731_v1 }
  0xf6   : > { %v641_v27 = vpop.f32.mrb[0].mxu0  ;;  %v693_v28 = vpop.f32.mrb[0].mxu1 }
  0xf7   : > { %v2394_v29 = vpop.f32.mrb[1].mxu0  ;;  %v2402_v30 = vpop.f32.mrb[1].mxu1  ;;  %v642_v53 = vadd.f32 %v2241_v45, %v641_v27  ;;  %v694_v54 = vadd.f32 %v2242_v46, %v693_v28 }
  0xf8   : > { %v644_v31 = vpop.f32.mrb[2].mxu0  ;;  %v696_v32 = vpop.f32.mrb[2].mxu1  ;;  %v2273_v29 = vld [vmem:[%s3262_s6] ss:$0 sm:$0xff] }
  0xf9   : > { %v2395_v33 = vpop.f32.mrb[3].mxu0  ;;  %v2403_v34 = vpop.f32.mrb[3].mxu1  ;;  %v1307_v0 = vmul.f32 0.35355338, %v642_v53  ;;  %v1308_v2 = vmul.f32 0.35355338, %v694_v54 }
  0xfa   : > { %v2274_v31 = vld [vmem:[%s3262_s6 + $0x1] ss:$0 sm:$0xff] }
  0xfb   : > { %v1311_v13 = vpack.c.bf16 %v1307_v0, %v1307_v0  ;;  %v1312_v14 = vpack.c.bf16 %v1308_v2, %v1308_v2 }
  0xfe   : > { %v745_v35 = vpop.f32.mrb[4].mxu0  ;;  %v797_v36 = vpop.f32.mrb[4].mxu1 }
  0xff   : > { %v2410_v37 = vpop.f32.mrb[5].mxu0  ;;  %v2418_v38 = vpop.f32.mrb[5].mxu1  ;;  %v746_v17 = vadd.f32 %v2243_v4, %v745_v35  ;;  %v798_v18 = vadd.f32 %v2244_v5, %v797_v36 }
 0x100   : > { %v748_v39 = vpop.f32.mrb[6].mxu0  ;;  %v800_v40 = vpop.f32.mrb[6].mxu1 }
 0x101   : > { %v2411_v41 = vpop.f32.mrb[7].mxu0  ;;  %v2419_v42 = vpop.f32.mrb[7].mxu1  ;;  %v1309_v25 = vmul.f32 0.35355338, %v746_v17  ;;  %v1310_v26 = vmul.f32 0.35355338, %v798_v18 }
 0x103   : > { %v1313_v27 = vpack.c.bf16 %v1309_v25, %v1309_v25  ;;  %v1314_v28 = vpack.c.bf16 %v1310_v26, %v1310_v26 }
 0x106   : > { %v893_v47 = vpop.f32.mrb[8].mxu0  ;;  %v945_v48 = vpop.f32.mrb[8].mxu1 }
 0x107   : > { %v894_v49 = vadd.f32 %v2257_v43, %v893_v47  ;;  %v946_v50 = vadd.f32 %v2258_v44, %v945_v48  ;;  %v2426_v51 = vpop.f32.mrb[9].mxu0  ;;  %v2434_v52 = vpop.f32.mrb[9].mxu1 }
 0x108   : > { %v896_v55 = vpop.f32.mrb[10].mxu0  ;;  %v948_v56 = vpop.f32.mrb[10].mxu1 }
 0x109   : > { %v1315_v57 = vpack.c.bf16 %v894_v49, %v894_v49  ;;  %v1316_v58 = vpack.c.bf16 %v946_v50, %v946_v50  ;;  %v2427_v59 = vpop.f32.mrb[11].mxu0  ;;  %v2435_v60 = vpop.f32.mrb[11].mxu1 }
 0x10b   : > { %v1328_v61 = vsel %vm1323_vm2, %v1315_v57, 0  ;;  %v1374_v62 = vsel %vm1323_vm2, %v1316_v58, 0 }
 0x10c   : > { %2485 = vmatpush3.bf16.xpose.msra.mxu0 %v1328_v61  ;;  %2491 = vmatpush3.bf16.xpose.msra.mxu1 %v1374_v62 }
 0x10d   : > { %2496 = vmatprep.subr.bf16.mxu0 %v2731_v1  ;;  %2502 = vmatprep.subr.bf16.mxu1 %v2731_v1 }
 0x10e   : > { %v997_v6 = vpop.f32.mrb[12].mxu0  ;;  %v1049_v8 = vpop.f32.mrb[12].mxu1 }
 0x10f   : > { %v998_v9 = vadd.f32 %v2259_v63, %v997_v6  ;;  %v1050_v10 = vadd.f32 %v2260_v3, %v1049_v8  ;;  %v2442_v11 = vpop.f32.mrb[13].mxu0  ;;  %v2450_v12 = vpop.f32.mrb[13].mxu1 }
 0x110   : > { %v1000_v15 = vpop.f32.mrb[14].mxu0  ;;  %v1052_v16 = vpop.f32.mrb[14].mxu1 }
 0x111   : > { %v1317_v19 = vpack.c.bf16 %v998_v9, %v998_v9  ;;  %v1318_v20 = vpack.c.bf16 %v1050_v10, %v1050_v10  ;;  %v2443_v21 = vpop.f32.mrb[15].mxu0  ;;  %v2451_v22 = vpop.f32.mrb[15].mxu1 }
 0x113   : > { %v1420_v23 = vsel %vm1323_vm2, %v1317_v19, 0  ;;  %v1466_v24 = vsel %vm1323_vm2, %v1318_v20, 0  ;;  %2487 = vmatmul.mubr.msk.bf16.vlgmr.msra.gmra.mrb[24].mxu0 %vm1323_vm2, %v1311_v13  ;;  %2493 = vmatmul.mubr.msk.bf16.vlgmr.msra.gmra.mrb[24].mxu1 %vm1323_vm2, %v1312_v14 }
 0x114   : > { %2497 = vmatpush3.bf16.xpose.msra.mxu0 %v1420_v23  ;;  %2503 = vmatpush3.bf16.xpose.msra.mxu1 %v1466_v24 }
 0x115   : > { %2498 = vmatprep.mubr.msk.bf16.mxu0 %vm2732_vm0, %v2731_v1  ;;  %2504 = vmatprep.mubr.msk.bf16.mxu1 %vm2732_vm0, %v2731_v1 }
 0x116   : > { %2508 = vmatprep.subr.bf16.mxu0 %v2731_v1  ;;  %2514 = vmatprep.subr.bf16.mxu1 %v2731_v1  ;;  %v1145_v30 = vpop.f32.mrb[16].mxu0 }
 0x117   : > { %v1146_v32 = vadd.f32 %v2273_v29, %v1145_v30  ;;  %v2458_v33 = vpop.f32.mrb[17].mxu0 }
 0x118   : > { %v1148_v34 = vpop.f32.mrb[18].mxu0  ;;  %v1197_v35 = vpop.f32.mrb[16].mxu1  ;;  %v2275_v33 = vld [vmem:[%s3262_s6 + $0x2] ss:$0 sm:$0xff] }
 0x119   : > { %v1319_v36 = vpack.c.bf16 %v1146_v32, %v1146_v32  ;;  %v2459_v37 = vpop.f32.mrb[19].mxu0  ;;  %v1198_v38 = vadd.f32 %v2274_v31, %v1197_v35  ;;  %v2466_v39 = vpop.f32.mrb[17].mxu1 }
 0x11a   : > { %v1200_v40 = vpop.f32.mrb[18].mxu1 }
 0x11b   : > { %2499 = vmatmul.mubr.msk.bf16.vlgmr.msra.gmra.mrb[28].mxu0 %vm1323_vm2, %v1313_v27  ;;  %2505 = vmatmul.mubr.msk.bf16.vlgmr.msra.gmra.mrb[28].mxu1 %vm1323_vm2, %v1314_v28  ;;  %v1561_v41 = vsel %vm1559_vm3, %v1319_v36, 0  ;;  %v1320_v42 = vpack.c.bf16 %v1198_v38, %v1198_v38  ;;  %v2467_v43 = vpop.f32.mrb[19].mxu1  ;;  %v2276_v36 = vld [vmem:[%s3262_s6 + $0x3] ss:$0 sm:$0xff] }
 0x11c   : > { %2510 = vmatprep.mubr.msk.bf16.mxu0 %vm2732_vm0, %v2731_v1  ;;  %2516 = vmatprep.mubr.msk.bf16.mxu1 %vm2732_vm0, %v2731_v1 }
 0x11d   : > { %2509 = vmatpush3.bf16.msra.mxu0 %v1561_v41  ;;  %v1607_v44 = vsel %vm1559_vm3, %v1320_v42, 0 }
 0x11e   : > { %2520 = vmatprep.subr.bf16.mxu0 %v2731_v1  ;;  %2515 = vmatpush3.bf16.msra.mxu1 %v1607_v44  ;;  %v3087_v45 = vpop.f32.mrb[20].mxu0 }
 0x11f   : > { %2526 = vmatprep.subr.bf16.mxu1 %v2731_v1  ;;  %v2474_v47 = vpop.f32.mrb[21].mxu0  ;;  %v1250_v34 = vadd.f32 %v2275_v33, %v3087_v45 }
 0x120   : > { %v3089_v46 = vpop.f32.mrb[20].mxu1  ;;  %v1252_v49 = vpop.f32.mrb[22].mxu0 }
 0x121   : > { %v2482_v48 = vpop.f32.mrb[21].mxu1  ;;  %v2475_v51 = vpop.f32.mrb[23].mxu0  ;;  %v1321_v38 = vpack.c.bf16 %v1250_v34, %v1250_v34  ;;  %v1302_v39 = vadd.f32 %v2276_v36, %v3089_v46  ;;  %v1745_v46 = vld [vmem:[%s3263_s7] sm:$0xf] }
 0x122   : > { %v1304_v50 = vpop.f32.mrb[22].mxu1 }
 0x123   : > { %v2483_v52 = vpop.f32.mrb[23].mxu1  ;;  %v1653_v44 = vsel %vm1559_vm3, %v1321_v38, 0  ;;  %v1322_v47 = vpack.c.bf16 %v1302_v39, %v1302_v39 }
 0x125   : > { %v1699_v50 = vsel %vm1559_vm3, %v1322_v47, 0 }
 0x1e6   : > { %v1364_v53 = vpop.f32.mrb[24].mxu0  ;;  %v1410_v54 = vpop.f32.mrb[24].mxu1 }
 0x1e7   : > { %v2488_v55 = vpop.f32.mrb[25].mxu0  ;;  %v2494_v56 = vpop.f32.mrb[25].mxu1  ;;  %v1508_v57 = vsel %vm1323_vm2, %v1364_v53, -inf  ;;  %v1511_v62 = vsel %vm1323_vm2, %v1410_v54, -inf }
 0x1e8   : > { %v1413_v58 = vpop.f32.mrb[26].mxu1  ;;  %1509 = vmax.xlane.f32.xlu0 %v1508_v57  ;;  %v1367_v59 = vpop.f32.mrb[26].mxu0  ;;  %v1746_v57 = vld [vmem:[%s3263_s7 + $0x4] sm:$0xf] }
 0x1e9   : > { %v2489_v60 = vpop.f32.mrb[27].mxu0  ;;  %v2495_v61 = vpop.f32.mrb[27].mxu1  ;;  %v1799_v58 = vsel %vm1559_vm3, %v1746_v57, 0  ;;  %v1747_v59 = vld [vmem:[%s3263_s7 + $0x8] sm:$0xf] }
 0x1ec   : > { %1512 = vmax.xlane.f32.xlu0 %v1511_v62 }
 0x1ee   : > { %v1456_v63 = vpop.f32.mrb[28].mxu0  ;;  %v1502_v0 = vpop.f32.mrb[28].mxu1 }
 0x1ef   : > { %v2500_v2 = vpop.f32.mrb[29].mxu0  ;;  %v2506_v3 = vpop.f32.mrb[29].mxu1  ;;  %v1514_v4 = vsel %vm1323_vm2, %v1456_v63, -inf  ;;  %v1517_v10 = vsel %vm1323_vm2, %v1502_v0, -inf }
 0x1f0   : > { %v1505_v5 = vpop.f32.mrb[30].mxu1  ;;  %1515 = vmax.xlane.f32.xlu1 %v1514_v4  ;;  %v1459_v6 = vpop.f32.mrb[30].mxu0  ;;  %v1748_v2 = vld [vmem:[%s3263_s7 + $0xc] sm:$0xf] }
 0x1f1   : > { %v2501_v8 = vpop.f32.mrb[31].mxu0  ;;  %v2507_v9 = vpop.f32.mrb[31].mxu1 }
 0x1f2   : > { %v1891_v8 = vsel %vm1559_vm3, %v1748_v2, 0 }
 0x1f4   : > { %1518 = vmax.xlane.f32.xlu1 %v1517_v10 }
 0x275   : > { %v1510_v11 = vpop.xlane.xlu0 %1509 }
 0x276   : > { %v1520_v12 = vsub.f32 %v1364_v53, %v1510_v11  ;;  %v1753_v53 = vsel %vm1559_vm3, %v1745_v46, 0 }
 0x278   : > { %v1524_v13 = vmul.f32 1.442695, %v1520_v12 }
 0x279   : > { %v1513_v14 = vpop.xlane.xlu0 %1512 }
 0x27a   : > { %2647 = vpow2.f32 %v1524_v13  ;;  %v1521_v15 = vsub.f32 %v1410_v54, %v1513_v14 }
 0x27c   : > { %v1526_v16 = vmul.f32 1.442695, %v1521_v15 }
 0x27d   : > { %v1516_v17 = vpop.xlane.xlu1 %1515 }
 0x27e   : > { %2649 = vpow2.f32 %v1526_v16  ;;  %v1522_v18 = vsub.f32 %v1456_v63, %v1516_v17  ;;  %v1845_v63 = vsel %vm1559_vm3, %v1747_v59, 0 }
 0x280   : > { %v1528_v19 = vmul.f32 1.442695, %v1522_v18 }
 0x281   : > { %v1519_v20 = vpop.xlane.xlu1 %1518 }
 0x282   : > { %2651 = vpow2.f32 %v1528_v19  ;;  %v1523_v21 = vsub.f32 %v1502_v0, %v1519_v20 }
 0x284   : > { %v2648_v22 = vpop.eup %2647  ;;  %v1530_v23 = vmul.f32 1.442695, %v1523_v21 }
 0x285   : > { %v1532_v24 = vsel %vm1323_vm2, %v2648_v22, 0.0 }
 0x286   : > { %2653 = vpow2.f32 %v1530_v23  ;;  %1533 = vadd.xlane.f32.xlu0 %v1532_v24 }
 0x288   : > { %v2650_v25 = vpop.eup %2649 }
 0x289   : > { %v1535_v26 = vsel %vm1323_vm2, %v2650_v25, 0.0 }
 0x28a   : > { %1536 = vadd.xlane.f32.xlu1 %v1535_v26 }
 0x28c   : > { %v2652_v27 = vpop.eup %2651 }
 0x28d   : > { %v1538_v28 = vsel %vm1323_vm2, %v2652_v27, 0.0 }
 0x28e   : > { %1539 = vadd.xlane.f32.xlu0 %v1538_v28 }
 0x290   : > { %v2654_v29 = vpop.eup %2653 }
 0x291   : > { %v1541_v30 = vsel %vm1323_vm2, %v2654_v29, 0.0 }
 0x292   : > { %1542 = vadd.xlane.f32.xlu1 %v1541_v30 }
 0x313   : > { %v1534_v31 = vpop.xlane.xlu0 %1533 }
 0x314   : > { %2655 = vrcp.f32 %v1534_v31 }
 0x317   : > { %v1537_v32 = vpop.xlane.xlu1 %1536 }
 0x318   : > { %2657 = vrcp.f32 %v1537_v32 }
 0x31b   : > { %v1540_v35 = vpop.xlane.xlu0 %1539 }
 0x31c   : > { %2659 = vrcp.f32 %v1540_v35 }
 0x31e   : > { %v2656_v37 = vpop.eup %2655 }
 0x31f   : > { %v1548_v40 = vmul.f32 %v2656_v37, %v2648_v22  ;;  %v1543_v41 = vpop.xlane.xlu1 %1542 }
 0x320   : > { %2661 = vrcp.f32 %v1543_v41 }
 0x321   : > { %v1552_v42 = vpack.c.bf16 %v1548_v40, %v1548_v40  ;;  %v2301_v40 = vld [vmem:[%s3264_s8] ss:$0 sm:$0xff] }
 0x322   : > { %v2658_v43 = vpop.eup %2657 }
 0x323   : > { %v1549_v48 = vmul.f32 %v2658_v43, %v2650_v25  ;;  %2511 = vmatmul.mubr.msk.bf16.vlgmr.msra.gmra.mrb[32].mxu0 %vm1323_vm2, %v1552_v42 }
 0x324   : > { %2521 = vmatpush3.bf16.msra.mxu0 %v1653_v44  ;;  %2522 = vmatprep.mubr.msk.bf16.mxu0 %vm2732_vm0, %v2731_v1 }
 0x325   : > { %v1553_v45 = vpack.c.bf16 %v1549_v48, %v1549_v48  ;;  %2532 = vmatprep.subr.bf16.mxu0 %v2731_v1 }
 0x326   : > { %v2660_v49 = vpop.eup %2659 }
 0x327   : > { %v1550_v51 = vmul.f32 %v2660_v49, %v2652_v27  ;;  %2517 = vmatmul.mubr.msk.bf16.vlgmr.msra.gmra.mrb[32].mxu1 %vm1323_vm2, %v1553_v45 }
 0x328   : > { %2527 = vmatpush3.bf16.msra.mxu1 %v1699_v50  ;;  %2528 = vmatprep.mubr.msk.bf16.mxu1 %vm2732_vm0, %v2731_v1 }
 0x329   : > { %v1554_v52 = vpack.c.bf16 %v1550_v51, %v1550_v51  ;;  %2538 = vmatprep.subr.bf16.mxu1 %v2731_v1 }
 0x32a   : > { %v2662_v54 = vpop.eup %2661 }
 0x32b   : > { %v1551_v55 = vmul.f32 %v2662_v54, %v2654_v29  ;;  %2523 = vmatmul.mubr.msk.bf16.vlgmr.msra.gmra.mrb[36].mxu0 %vm1323_vm2, %v1554_v52  ;;  %v2642_v54 = vld [vmem:[%s3269_s13 + $0x8] sm:$0xff]  }
 0x32c   : > { %2533 = vmatpush3.bf16.msra.mxu0 %v1753_v53  ;;  %2534 = vmatprep.mubr.msk.bf16.mxu0 %vm2732_vm0, %v2731_v1  ;;  %v2641_v53 = vld [vmem:[%s3269_s13] sm:$0xff]  }
 0x32d   : > { %v1555_v56 = vpack.c.bf16 %v1551_v55, %v1551_v55  ;;  %2544 = vmatprep.subr.bf16.mxu0 %v2731_v1  ;;  %v2644_v55 = vld [vmem:[%s3271_s15 + $0x8] sm:$0xff]  }
 0x32f   : > { %2529 = vmatmul.mubr.msk.bf16.vlgmr.msra.gmra.mrb[36].mxu1 %vm1323_vm2, %v1555_v56 }
 0x330   : > { %2540 = vmatprep.mubr.msk.bf16.mxu1 %vm2732_vm0, %v2731_v1  ;;  %2539 = vmatpush3.bf16.msra.mxu1 %v1799_v58 }
 0x331   : > { %2550 = vmatprep.subr.bf16.mxu1 %v2731_v1 }
 0x3f6   : > { %v1597_v60 = vpop.f32.mrb[32].mxu0 }
 0x3f7   : > { %v1741_v61 = vpack.c.bf16 %v1597_v60, %v1597_v60  ;;  %v2512_v62 = vpop.f32.mrb[33].mxu0  ;;  %v2302_v60 = vld [vmem:[%s3265_s9] ss:$0 sm:$0xff] }
 0x3f8   : > { %v1600_v0 = vpop.f32.mrb[34].mxu0  ;;  %v2303_v62 = vld [vmem:[%s3266_s10] ss:$0 sm:$0xff] }
 0x3f9   : > { %v2513_v3 = vpop.f32.mrb[35].mxu0  ;;  %2535 = vmatmul.mubr.msk.bf16.vlgmr.msra.gmra.mrb[40].mxu0 %vm1323_vm2, %v1741_v61 }
 0x3fa   : > { %v1643_v4 = vpop.f32.mrb[32].mxu1  ;;  %2545 = vmatpush3.bf16.msra.mxu0 %v1845_v63  ;;  %2546 = vmatprep.mubr.msk.bf16.mxu0 %vm2732_vm0, %v2731_v1  ;;  %v2645_v3 = vld [vmem:[%s3271_s15 + $0x10] sm:$0xff]  }
 0x3fb   : > { %v1742_v5 = vpack.c.bf16 %v1643_v4, %v1643_v4  ;;  %v2518_v6 = vpop.f32.mrb[33].mxu1  ;;  %2556 = vmatprep.subr.bf16.mxu0 %v2731_v1  ;;  %v2646_v4 = vld [vmem:[%s3271_s15 + $0x18] sm:$0xff]  }
 0x3fc   : > { %v1646_v9 = vpop.f32.mrb[34].mxu1 }
 0x3fd   : > { %v2519_v10 = vpop.f32.mrb[35].mxu1  ;;  %2541 = vmatmul.mubr.msk.bf16.vlgmr.msra.gmra.mrb[40].mxu1 %vm1323_vm2, %v1742_v5  ;;  %v2304_v5 = vld [vmem:[%s3270_s14] ss:$0 sm:$0xff] }
 0x3fe   : > { %v1689_v11 = vpop.f32.mrb[36].mxu0  ;;  %2551 = vmatpush3.bf16.msra.mxu1 %v1891_v8  ;;  %2552 = vmatprep.mubr.msk.bf16.mxu1 %vm2732_vm0, %v2731_v1 }
 0x3ff   : > { %v1743_v12 = vpack.c.bf16 %v1689_v11, %v1689_v11  ;;  %v2524_v13 = vpop.f32.mrb[37].mxu0  ;;  %2564 = vmatprep.subr.bf16.mxu1 %v2731_v1 }
 0x400   : > { %v1692_v14 = vpop.f32.mrb[38].mxu0 }
 0x401   : > { %v2525_v15 = vpop.f32.mrb[39].mxu0  ;;  %2547 = vmatmul.mubr.msk.bf16.vlgmr.msra.gmra.mrb[44].mxu0 %vm1323_vm2, %v1743_v12 }
 0x402   : > { %v1735_v16 = vpop.f32.mrb[36].mxu1  ;;  %2560 = vmatprep.mubr.msk.bf16.mxu0 %vm2732_vm0, %v2731_v1  ;;  %2557 = vmatpush3.bf16.msra.mxu0 %v2641_v53 }
 0x403   : > { %v1744_v17 = vpack.c.bf16 %v1735_v16, %v1735_v16  ;;  %v2530_v18 = vpop.f32.mrb[37].mxu1  ;;  %2558 = vmatprep.subr.bf16.mxu0 %v2731_v1 }
 0x404   : > { %v1738_v19 = vpop.f32.mrb[38].mxu1 }
 0x405   : > { %v2531_v20 = vpop.f32.mrb[39].mxu1  ;;  %2553 = vmatmul.mubr.msk.bf16.vlgmr.msra.gmra.mrb[44].mxu1 %vm1323_vm2, %v1744_v17 }
 0x406   : > { %2572 = vmatprep.mubr.msk.bf16.mxu1 %vm2732_vm0, %v2731_v1  ;;  %2559 = vmatpush3.bf16.msra.mxu0 %v2642_v54 }
 0x4cc   : > { %v1789_v21 = vpop.f32.mrb[40].mxu0 }
 0x4cd   : > { %v2536_v22 = vpop.f32.mrb[41].mxu0  ;;  %v1933_v26 = vsel %vm603_vm1, %v1789_v21, 0.0 }
 0x4ce   : > { %v1792_v23 = vpop.f32.mrb[42].mxu0 }
 0x4cf   : > { %v2537_v24 = vpop.f32.mrb[43].mxu0 }
 0x4d0   : > { %v1835_v25 = vpop.f32.mrb[40].mxu1 }
 0x4d1   : > { %v1934_v27 = vsel %vm603_vm1, %v1835_v25, 0.0  ;;  %v2542_v28 = vpop.f32.mrb[41].mxu1 }
 0x4d2   : > { %v1935_v29 = vadd.f32 %v1934_v27, %v1933_v26  ;;  %v1838_v30 = vpop.f32.mrb[42].mxu1 }
 0x4d3   : > { %v2543_v31 = vpop.f32.mrb[43].mxu1  ;;  %v2314_v30 = vld [vmem:[%s3267_s11] ss:$0 sm:$0xff] }
 0x4d4   : > { %v1881_v32 = vpop.f32.mrb[44].mxu0 }
 0x4d5   : > { %v1936_v33 = vsel %vm603_vm1, %v1881_v32, 0.0  ;;  %v2548_v34 = vpop.f32.mrb[45].mxu0  ;;  %v2315_v32 = vld [vmem:[%s3268_s12] ss:$0 sm:$0xff] }
 0x4d6   : > { %v1937_v35 = vadd.f32 %v1936_v33, %v1935_v29  ;;  %v1884_v36 = vpop.f32.mrb[46].mxu0 }
 0x4d7   : > { %v2549_v37 = vpop.f32.mrb[47].mxu0 }
 0x4d8   : > { %v1927_v38 = vpop.f32.mrb[44].mxu1 }
 0x4d9   : > { %v1938_v39 = vsel %vm603_vm1, %v1927_v38, 0.0  ;;  %v2554_v41 = vpop.f32.mrb[45].mxu1 }
 0x4da   : > { %v1939_v42 = vadd.f32 %v1938_v39, %v1937_v35  ;;  %v1930_v43 = vpop.f32.mrb[46].mxu1 }
 0x4db   : > { %v2555_v44 = vpop.f32.mrb[47].mxu1 }
 0x4dc   : > { %v1947_v47 = vadd.f32 %v2301_v40, %v1939_v42 }
 0x4de   : > { %v1948_v48 = vadd.f32 %v1947_v47, %v2904_v7  ;;  %v2643_v7 = vld [vmem:[%s3271_s15] sm:$0xff]  }
 0x4df   : > { %2565 = vmatpush3.bf16.msra.mxu1 %v2643_v7 }
 0x4e0   : > { %v1951_v45 = vsel %vm603_vm1, %v1948_v48, 0.0  ;;  %2566 = vmatprep.subr.bf16.mxu1 %v2731_v1 }
 0x4e1   : > { %1952 = vadd.xlane.f32.xlu0 %v1951_v45 }
 0x4e3   : > { %2567 = vmatpush3.bf16.msra.mxu1 %v2644_v55 }
 0x4e4   : > { %2568 = vmatprep.subr.bf16.mxu1 %v2731_v1 }
 0x4e7   : > { %2569 = vmatpush3.bf16.msra.mxu1 %v2645_v3 }
 0x4e8   : > { %2570 = vmatprep.subr.bf16.mxu1 %v2731_v1  ;;  %v2308_v1 = vld [vmem:[%s3272_s16] ss:$0 sm:$0xff] }
 0x4eb   : > { %2571 = vmatpush3.bf16.msra.mxu1 %v2646_v4 }
 0x56e   : > { %v1953_v49 = vpop.xlane.xlu0 %1952 }
 0x56f   : > { %v1955_v46 = vmul.f32 0.03125, %v1953_v49 }
 0x571   : > { %v1956_v50 = vsub.f32 %v1948_v48, %v1955_v46 }
 0x573   : > { %v1957_v51 = vmul.f32 %v1956_v50, %v1956_v50 }
 0x575   : > { %v1958_v52 = vsel %vm603_vm1, %v1957_v51, 0.0 }
 0x576   : > { %1959 = vadd.xlane.f32.xlu1 %v1958_v52 }
 0x603   : > { %v1960_v56 = vpop.xlane.xlu1 %1959 }
 0x604   : > { %v1961_v57 = vmul.f32 0.03125, %v1960_v56 }
 0x606   : > { %v1962_v58 = vadd.f32 1e-05, %v1961_v57 }
 0x608   : > { %2663 = vrsqrt.f32 %v1962_v58 }
 0x612   : > { %v2664_v59 = vpop.eup %2663 }
 0x613   : > { %v1964_v61 = vmul.f32 %v2664_v59, %v1956_v50 }
 0x615   : > { %v1971_v63 = vmul.f32 %v2302_v60, %v1964_v61 }
 0x617   : > { %v1978_v0 = vadd.f32 %v2303_v62, %v1971_v63 }
 0x619   : > { %v1979_v2 = vpack.c.bf16 %v1978_v0, %v1978_v0 }
 0x61b   : > { %2561 = vmatmul.mubr.msk.bf16.vlgmr.msra.gmra.mrb[48].mxu0 %vm603_vm1, %v1979_v2 }
 0x6ee   : > { %v2040_v6 = vpop.f32.mrb[48].mxu0 }
 0x6ef   : > { %v2041_v8 = vadd.f32 %v2304_v5, %v2040_v6  ;;  %v2562_v9 = vpop.f32.mrb[49].mxu0 }
 0x6f0   : > { %v2043_v10 = vpop.f32.mrb[50].mxu0 }
 0x6f1   : > { %v2046_v11 = vmax.f32 %v2041_v8, 0.0  ;;  %v2563_v12 = vpop.f32.mrb[51].mxu0 }
 0x6f3   : > { %v2047_v13 = vpack.c.bf16 %v2046_v11, %v2046_v11 }
 0x6f5   : > { %2573 = vmatmul.mubr.msk.bf16.vlgmr.msra.gmra.mrb[48].mxu1 %vm2087_vm4, %v2047_v13 }
 0x7c8   : > { %v2125_v14 = vpop.f32.mrb[48].mxu1 }
 0x7c9   : > { %v2126_v15 = vadd.f32 %v2308_v1, %v2125_v14  ;;  %v2574_v16 = vpop.f32.mrb[49].mxu1 }
 0x7ca   : > { %v2128_v17 = vpop.f32.mrb[50].mxu1 }
 0x7cb   : > { %v2575_v18 = vpop.f32.mrb[51].mxu1  ;;  %v2131_v19 = vadd.f32 %v2126_v15, %v1978_v0 }
 0x7cd   : > { %v2134_v20 = vsel %vm603_vm1, %v2131_v19, 0.0 }
 0x7ce   : > { %2135 = vadd.xlane.f32.xlu0 %v2134_v20 }
 0x85b   : > { %v2136_v21 = vpop.xlane.xlu0 %2135 }
 0x85c   : > { %v2137_v22 = vmul.f32 0.03125, %v2136_v21 }
 0x85e   : > { %v2138_v23 = vsub.f32 %v2131_v19, %v2137_v22 }
 0x860   : > { %v2139_v24 = vmul.f32 %v2138_v23, %v2138_v23 }
 0x862   : > { %v2140_v25 = vsel %vm603_vm1, %v2139_v24, 0.0 }
 0x863   : > { %2141 = vadd.xlane.f32.xlu1 %v2140_v25 }
 0x8f0   : > { %v2142_v26 = vpop.xlane.xlu1 %2141 }
 0x8f1   : > { %v2143_v27 = vmul.f32 0.03125, %v2142_v26 }
 0x8f3   : > { %v2144_v28 = vadd.f32 1e-05, %v2143_v27 }
 0x8f5   : > { %2665 = vrsqrt.f32 %v2144_v28 }
 0x8ff   : > { %v2666_v29 = vpop.eup %2665 }
 0x900   : > { %v2146_v31 = vmul.f32 %v2666_v29, %v2138_v23 }
 0x902   : > { %v2153_v33 = vmul.f32 %v2314_v30, %v2146_v31 }
 0x904   : > { %v2160_v34 = vadd.f32 %v2315_v32, %v2153_v33 }
 0x906   : > { %2161 = vst.msk [vmem:[%s539_s18] sm:$0xff] %vm603_vm1, %v2160_v34 }
 0x907   : > { %2680 = shalt.err (!%p2677_p3)
}
 0x908   : > { %s2681_s2 = scalar_lea.hbm %s3213_s3, 128  ;;  %s2685_s30 = scalar_lea.hbm %s3273_s17, 256 }
 0x909   : > { %p2682_p4 = scmp.ne.s32.totalorder %s3213_s3, %s2681_s2  ;;  %p2686_p9 = scmp.lt.u32.totalorder %s3213_s3, %s3273_s17 }
 0x90a   : > { %p2687_p10 = scmp.lt.u32.totalorder %s2685_s30, %s2681_s2  ;;  %p2689_p12 = scmp.lt.u32.totalorder %s2681_s2, %s3213_s3 }
 0x90b   : > { %p2683_p7 = pnand %p2682_p4, %p2862_p5 }
 0x90c   : > { %p2688_p11 = por %p2687_p10, %p2686_p9 }
 0x90d   : > { %p2684_p8 = pneg %p2683_p7 }
 0x90e   : > { %p2690_p13 = por %p2689_p12, %p2688_p11 }
 0x910   : > { %p2691_p0 = pnand %p2690_p13, %p2684_p8 }
 0x912   : > { %2694 = shalt.err (!%p2691_p0)
}
 0x913   : > { %2576 = dma.vmem_to_hbm [thread:$0]  (%p2862_p5), %s3215_s21, 128, %s3213_s3, %s2163_s24  }
 0x914 PF: > { %s3295_s20 = sld [smem:[#allocation5_spill]]  ;;  %p2582_p1 = scmp.ge.s32.totalorder %s2729_s27, 2 }
 0x916   : > { %p2579_p2 = pnand %p2582_p1, %p2866_p6 }
 0x91a   : > { %s2188_s0 = sand.u32 1, %s3295_s20  }
 0x91b   : > { %s2189_s29 = scalar_lea.sflag [#allocation3], %s2188_s0 }
 0x91c   : > { %2712 = dma.done.wait (!%p2579_p2), %s2189_s29, 128  }
 0x91d   : > { %2714 = vsyncadd (!%p2579_p2), %s2189_s29, 4294967168  ;;  %s3297_s27 = sld [smem:[#allocation7_spill]]  ;;  %s3298_s2 = sld [smem:[#allocation6_spill]] }
 0x91e   : > { %s3299_s26 = sld [smem:[#allocation8_spill]]  ;;  %s3300_s24 = smov %s2721_s25 }
 0x923   : > { %p27_p3 = scmp.ge.s32.totalorder %s3297_s27, 4   ;;  %s3301_s25 = smov %s3298_s2 }
 0x925   :  { %29 = sbr.rel (!%p27_p3) target bundleno = 8 (0x8), region = 123 }
 0x92c   :  { %2194 = vsyncpa [#allocation3], 1 }
 0x92d   :  { %2196 = vsyncpa [#allocation3 + $0x1], 1 }

</bundles_post_ra>
